<compile_context>
chip_gen: v7x
topology: tpu7x:2x2x1
jax: 0.10.0
libtpu: 0.0.40
codegen_flags: <defaults>
</compile_context>

<pallas_src>
import functools

import jax
import jax.numpy as jnp
from jax.experimental import pallas as pl
from jax.experimental.pallas import tpu as pltpu

NEGATIVE_SLOPE = 1.0


def _round_up(x, m):
    return ((x + m - 1) // m) * m


def _sublane_multiple(dtype):
    # dtype-aware sublane minimum: f32 -> 8, bf16 -> 16, int8/fp8 -> 32.
    return {4: 8, 2: 16, 1: 32}.get(jnp.dtype(dtype).itemsize, 8)


def _pick_tile(dim, cap):
    """Pick a lane-aligned (multiple-of-128) tile for `dim`.

    Prefers configurations that need no padding: single block if dim <= cap,
    otherwise the largest multiple of 128 <= cap that divides dim exactly.
    Falls back to `cap` with padding only if no divisor exists.
    Returns (tile, padded_dim).
    """
    if dim <= cap:
        t = _round_up(dim, 128)
        return t, t
    for t in range(cap, 127, -128):
        if dim % t == 0:
            return t, dim
    return cap, _round_up(dim, cap)


# --------------------------- fast path (single block) ------------------------
def _small_linear_kernel(negative_slope, x_ref, wt_ref, b_ref, o_ref):
    y = jnp.dot(x_ref[...], wt_ref[...], preferred_element_type=jnp.float32)
    y = y + b_ref[...]
    # Keep original module semantics (identity except for the sign of zero).
    o_ref[...] = jnp.where(y != 0, y, -negative_slope * y).astype(o_ref.dtype)


# --------------------------- general tiled path -------------------------------
def _tiled_linear_kernel(negative_slope, x_ref, wt_ref, b_ref, o_ref, acc_ref=None):
    # For f32 outputs the output block is resident across the whole K loop,
    # so accumulate directly into it (acc_ref is None -> no scratch needed).
    acc = o_ref if acc_ref is None else acc_ref
    k = pl.program_id(2)

    @pl.when(k == 0)
    def _():
        acc[...] = jnp.zeros_like(acc)

    # (tm, tk) @ (tk, tn) -> (tm, tn): standard contraction, pure MXU work.
    acc[...] += jnp.dot(x_ref[...], wt_ref[...], preferred_element_type=jnp.float32)

    @pl.when(k == pl.num_programs(2) - 1)
    def _():
        y = acc[...] + b_ref[...]
        o_ref[...] = jnp.where(y != 0, y, -negative_slope * y).astype(o_ref.dtype)


def linear_where(x, weight, bias, negative_slope=NEGATIVE_SLOPE):
    B, IN = x.shape
    OUT, IN_w = weight.shape
    assert IN == IN_w
    out_dtype = x.dtype

    # One-time wrapper-side layout change: W (OUT, IN) -> W.T (K, N) so the
    # kernel never transposes a weight tile per K step.
    w_t = weight.T
    b2 = bias.reshape(1, OUT)

    # ---- small-problem fast path: single full-array block, no padding ------
    if B <= 256 and IN <= 2048 and OUT <= 1024:
        return pl.pallas_call(
            functools.partial(_small_linear_kernel, negative_slope),
            out_shape=jax.ShapeDtypeStruct((B, OUT), out_dtype),
        )(x, w_t, b2)

    # ---- tiled GEMM path ----------------------------------------------------
    sub = _sublane_multiple(x.dtype)
    tm = min(128, _round_up(B, sub))
    M_pad = _round_up(B, tm)
    tk, K_pad = _pick_tile(IN, 2048)   # large K tiles to amortize per-step cost
    tn, N_pad = _pick_tile(OUT, 512)   # lane-dense, multiple of 256 for v6e MXU

    # v7x megacore: keep >= 2 blocks on a parallel axis so both TCs get work.
    if M_pad // tm == 1 and N_pad // tn == 1 and tn >= 256 and tn % 256 == 0:
        tn //= 2

    # Pad only when actually required (K padding is required for correctness
    # of the accumulation; M/N padded garbage is sliced off below).
    if (M_pad, K_pad) != (B, IN):
        x = jnp.pad(x, ((0, M_pad - B), (0, K_pad - IN)))
    if (K_pad, N_pad) != (IN, OUT):
        w_t = jnp.pad(w_t, ((0, K_pad - IN), (0, N_pad - OUT)))
    if N_pad != OUT:
        b2 = jnp.pad(b2, ((0, 0), (0, N_pad - OUT)))

    grid = (M_pad // tm, N_pad // tn, K_pad // tk)

    accumulate_in_out = out_dtype == jnp.float32
    scratch = [] if accumulate_in_out else [pltpu.VMEM((tm, tn), jnp.float32)]

    out_padded = pl.pallas_call(
        functools.partial(_tiled_linear_kernel, negative_slope),
        out_shape=jax.ShapeDtypeStruct((M_pad, N_pad), out_dtype),
        grid_spec=pltpu.PrefetchScalarGridSpec(
            num_scalar_prefetch=0,
            grid=grid,
            in_specs=[
                pl.BlockSpec((tm, tk), lambda i, j, k: (i, k)),
                pl.BlockSpec((tk, tn), lambda i, j, k: (k, j)),
                pl.BlockSpec((1, tn), lambda i, j, k: (0, j)),
            ],
            out_specs=pl.BlockSpec((tm, tn), lambda i, j, k: (i, j)),
            scratch_shapes=scratch,
        ),
        compiler_params=pltpu.CompilerParams(
            dimension_semantics=("parallel", "parallel", "arbitrary"),
            vmem_limit_bytes=32 * 1024 * 1024,  # ~11 MiB actually used; safe on v5e/v6e/v7x
        ),
    )(x, w_t, b2)

    if (M_pad, N_pad) != (B, OUT):
        out_padded = out_padded[:B, :OUT]
    return out_padded


if __name__ == "__main__":
    key = jax.random.PRNGKey(0)
    k_x, k_w, k_b = jax.random.split(key, 3)

    # Matches the module's X = torch.randn(1, 3) with a small linear layer.
    B, IN, OUT = 1, 3, 4
    x = jax.random.normal(k_x, (B, IN), dtype=jnp.float32)
    weight = jax.random.normal(k_w, (OUT, IN), dtype=jnp.float32)
    bias = jax.random.normal(k_b, (OUT,), dtype=jnp.float32)

    out = linear_where(x, weight, bias)
    jax.block_until_ready(out)

    y_ref = x @ weight.T + bias
    ref = jnp.where(y_ref != 0, y_ref, -NEGATIVE_SLOPE * y_ref)
    assert out.shape == ref.shape
    assert jnp.allclose(out, ref, atol=1e-5, rtol=1e-5)

    # Exercise the tiled (multi-block) path once on a larger shape.
    B2, IN2, OUT2 = 8, 4096, 1536
    k_x2, k_w2, k_b2 = jax.random.split(jax.random.PRNGKey(1), 3)
    x2 = jax.random.normal(k_x2, (B2, IN2), dtype=jnp.float32)
    w2 = jax.random.normal(k_w2, (OUT2, IN2), dtype=jnp.float32) * 0.02
    bias2 = jax.random.normal(k_b2, (OUT2,), dtype=jnp.float32)

    out2 = linear_where(x2, w2, bias2)
    jax.block_until_ready(out2)
    ref2 = x2 @ w2.T + bias2
    assert jnp.allclose(out2, ref2, atol=1e-2, rtol=1e-3)

    print("KERNEL_OK")
</pallas_src>

<mosaic_0001>
module attributes {stable_mosaic.version = 11 : i64} {
  func.func @_small_linear_kernel(%arg0: memref<1x3xf32, #tpu.memory_space<vmem>>, %arg1: memref<3x4xf32, #tpu.memory_space<vmem>>, %arg2: memref<1x4xf32, #tpu.memory_space<vmem>>, %arg3: memref<1x4xf32, #tpu.memory_space<vmem>>) attributes {dimension_semantics = [], scalar_prefetch = 0 : i64, scratch_operands = 0 : i64, tpu.core_type = #tpu.core_type<tc>} {
    %c0 = arith.constant 0 : index
    %c0_0 = arith.constant 0 : index
    %0 = vector.load %arg0[%c0, %c0_0] : memref<1x3xf32, #tpu.memory_space<vmem>>, vector<1x3xf32>
    %c0_1 = arith.constant 0 : index
    %c0_2 = arith.constant 0 : index
    %1 = vector.load %arg1[%c0_1, %c0_2] : memref<3x4xf32, #tpu.memory_space<vmem>>, vector<3x4xf32>
    %cst = arith.constant dense<0.000000e+00> : vector<1x4xf32>
    %2 = tpu.matmul %0, %1, %cst {dimension_numbers = #tpu.dot_dimension_numbers<[1], [0], [0], [1], [0, 0, 1, 1], [], []>} : vector<1x3xf32>, vector<3x4xf32>, vector<1x4xf32> -> vector<1x4xf32>
    %c0_3 = arith.constant 0 : index
    %c0_4 = arith.constant 0 : index
    %3 = vector.load %arg2[%c0_3, %c0_4] : memref<1x4xf32, #tpu.memory_space<vmem>>, vector<1x4xf32>
    %4 = arith.addf %2, %3 : vector<1x4xf32>
    %cst_5 = arith.constant 0.000000e+00 : f32
    %5 = vector.broadcast %cst_5 : f32 to vector<1x4xf32>
    %6 = arith.cmpf one, %4, %5 : vector<1x4xf32>
    %cst_6 = arith.constant -1.000000e+00 : f32
    %7 = vector.broadcast %cst_6 : f32 to vector<1x4xf32>
    %8 = arith.mulf %7, %4 : vector<1x4xf32>
    %9 = arith.select %6, %4, %8 : vector<1x4xi1>, vector<1x4xf32>
    %c0_7 = arith.constant 0 : index
    %c0_8 = arith.constant 0 : index
    %10 = vector.load %arg3[%c0_7, %c0_8] : memref<1x4xf32, #tpu.memory_space<vmem>>, vector<1x4xf32>
    tpu.vector_store %arg3[%c0_7, %c0_8], %9 {strides = array<i32>} : memref<1x4xf32, #tpu.memory_space<vmem>>, vector<1x4xf32>,
    return
  }
}

</mosaic_0001>

<bundles_post_ra>
// kernel: tpu_custom_call.1
= control target key start
LH: loop header
LB: loop body
LE: loop exit
PB: predicated region body
PF: predicated region fallthrough
CT: control target
= control target key end

     0   :  { %8 = vsyncpa [#allocation3], 0  ;;  %s291_s0 = inlined_call_operand.hbm [shape: f32[1,3], index: 0, kind: input, shape index: {}]   ;;  %s292_s1 = inlined_call_operand.hbm [shape: f32[3,4], index: 1, kind: input, shape index: {}]   ;;  %s293_s2 = inlined_call_operand.vmem [shape: f32[1,4], index: 2, kind: input, shape index: {}]   ;;  %s294_s3 = inlined_call_operand.hbm [shape: f32[1,4], index: 3, kind: output, shape index: {}]  }
   0x1   :  { %9 = vsyncpa [#allocation6], 0 }
   0x2   :  { %10 = vsyncpa [#allocation4], 0  ;;  %s227_s12 = smov [#allocation2]   ;;  %s228_s14 = smov [#allocation5]  }
   0x3   :  { %s17_s13 = sshll.u32 %s227_s12, 4  ;;  %s27_s15 = sshll.u32 %s228_s14, 4  ;;  %s18_s13 = int_to_ptr.vmem [resolvable:$true] %s17_s13  ;;  %s28_s15 = int_to_ptr.vmem [resolvable:$true] %s27_s15 }
   0x4   :  { %s155_s18 = scalar_lea.hbm %s291_s0, 16 }
   0x5   :  { %p156_p0 = scmp.ne.s32.totalorder %s291_s0, %s155_s18  ;;  %p159_p1 = scmp.lt.u32.totalorder %s155_s18, %s291_s0 }
   0x7   :  { %p161_p2 = pnand %p159_p1, %p156_p0 }
   0x9   :  { %164 = shalt.err (!%p161_p2)
}
   0xa   :  { %s165_s23 = scalar_lea.vmem %s18_s13, 16  ;;  %s169_s24 = scalar_lea.vmem %s18_s13, 32 }
   0xb   :  { %p166_p3 = scmp.ne.s32.totalorder %s18_s13, %s165_s23  ;;  %p170_p4 = scmp.lt.s32.totalorder %s18_s13, %s18_s13 }
   0xc   :  { %p171_p5 = scmp.lt.s32.totalorder %s169_s24, %s165_s23 }
   0xe   :  { %p172_p6 = por %p171_p5, %p170_p4 }
  0x10   :  { %p173_p7 = pnand %p172_p6, %p166_p3 }
  0x12   :  { %176 = shalt.err (!%p173_p7)
}
  0x13   :  { %20 = dma.hbm_to_vmem [thread:$0]  %s291_s0, 16, %s18_s13, [#allocation3]  }
  0x14   :  { %s177_s29 = scalar_lea.hbm %s292_s1, 64 }
  0x15   :  { %p178_p8 = scmp.ne.s32.totalorder %s292_s1, %s177_s29  ;;  %p181_p9 = scmp.lt.u32.totalorder %s177_s29, %s292_s1 }
  0x17   :  { %p183_p10 = pnand %p181_p9, %p178_p8 }
  0x19   :  { %186 = shalt.err (!%p183_p10)
}
  0x1a   :  { %s187_s7 = scalar_lea.vmem %s28_s15, 64  ;;  %p192_p12 = scmp.lt.s32.totalorder %s28_s15, %s28_s15 }
  0x1b   :  { %p188_p11 = scmp.ne.s32.totalorder %s28_s15, %s187_s7  ;;  %p193_p13 = scmp.lt.s32.totalorder %s187_s7, %s187_s7 }
  0x1d   :  { %p194_p0 = por %p193_p13, %p192_p12 }
  0x1f   :  { %p195_p1 = pnand %p194_p0, %p188_p11 }
  0x21   :  { %198 = shalt.err (!%p195_p1)
}
  0x22   :  { %30 = dma.hbm_to_vmem [thread:$0]  %s292_s1, 64, %s28_s15, [#allocation6]  }
  0x23   :  { %221 = dma.done.wait [#allocation3], 16  }
  0x24   :  { %222 = vsyncadd [#allocation3], 4294967280 }
  0x25   :  { %223 = dma.done.wait [#allocation6], 64  }
  0x26   :  { %224 = vsyncadd [#allocation6], 4294967232  ;;  %v229_v0 = vmov 0.0   ;;  %vm230_vm0 = vmmov 0   ;;  %vm46_vm1 = vcmask 1042432   ;;  %vm42_vm2 = vcmask 23552  }
  0x27   :  { %145 = vmatprep.subr.mxu0 %v229_v0  ;;  %147 = vmatprep.mubr.msk.f32.mxu0 %vm230_vm0, %v229_v0  ;;  %v40_v1 = vld [vmem:[#allocation5] sm:$0x7]  ;;  %v39_v2 = vld [vmem:[#allocation2] sm:$0x1]  ;;  %s231_s1 = smov [#allocation7]   ;;  %vm123_vm4 = vcmask 24576  }
  0x28   :  { %146 = vmatpush3.msk.msra.mxu0 %vm46_vm1, %v40_v1  ;;  %v41_v3 = vld [vmem:[%s293_s2] sm:$0x1]  ;;  %s131_s11 = sshll.u32 %s231_s1, 4  ;;  %s132_s11 = int_to_ptr.vmem [resolvable:$true] %s131_s11 }
  0x29   :  { %148 = vmatmul.mubr.msk.f32.vlgmr.msra.gmra.mrb[0].mxu0 %vm42_vm2, %v39_v2  ;;  %s199_s12 = scalar_lea.vmem %s132_s11, 16  ;;  %s203_s13 = scalar_lea.vmem %s132_s11, 32 }
  0x2a   :  { %p200_p2 = scmp.ne.s32.totalorder %s132_s11, %s199_s12  ;;  %p204_p3 = scmp.lt.s32.totalorder %s132_s11, %s132_s11 }
  0x2b   :  { %p205_p4 = scmp.lt.s32.totalorder %s203_s13, %s199_s12 }
  0x2d   :  { %p206_p5 = por %p205_p4, %p204_p3 }
  0x2f   :  { %p207_p6 = pnand %p206_p5, %p200_p2 }
  0xfc   :  { %v116_v4 = vpop.f32.mrb[0].mxu0 }
  0xfd   :  { %v117_v5 = vadd.f32 %v116_v4, %v41_v3  ;;  %v149_v6 = vpop.f32.mrb[1].mxu0 }
  0xff   :  { %vm120_vm3 = vcmp.ne.f32.partialorder %v117_v5, 0.0  ;;  %v121_v7 = vmul.f32 -1.0, %v117_v5 }
 0x101   :  { %v122_v8 = vsel %vm120_vm3, %v117_v5, %v121_v7 }
 0x102   :  { %124 = vst.msk [vmem:[#allocation7] sm:$0x1] %vm123_vm4, %v122_v8 }
 0x103   :  { %210 = shalt.err (!%p207_p6)
}
 0x104   :  { %s211_s15 = scalar_lea.hbm %s294_s3, 16 }
 0x105   :  { %p212_p7 = scmp.ne.s32.totalorder %s294_s3, %s211_s15  ;;  %p215_p8 = scmp.lt.u32.totalorder %s211_s15, %s294_s3 }
 0x107   :  { %p217_p9 = pnand %p215_p8, %p212_p7 }
 0x109   :  { %220 = shalt.err (!%p217_p9)
}
 0x10a   :  { %134 = dma.vmem_to_hbm [thread:$0]  %s132_s11, 16, %s294_s3, [#allocation4]  }
 0x10b   :  { %225 = dma.done.wait [#allocation4], 16  }
 0x10c   :  { %226 = vsyncadd [#allocation4], 4294967280 }
 0x10d   :  { %138 = vsyncpa [#allocation3], 1 }
 0x10e   :  { %139 = vsyncpa [#allocation6], 1 }
 0x10f   :  { %140 = vsyncpa [#allocation4], 1 }

</bundles_post_ra>
